<compile_context>
chip_gen: v7x
topology: tpu7x:2x2x1
jax: 0.10.0
libtpu: 0.0.40
codegen_flags: <defaults>
</compile_context>

<pallas_src>
import functools

import jax
import jax.numpy as jnp
from jax import lax
from jax.experimental import pallas as pl
from jax.experimental.pallas import tpu as pltpu


# ---------------------------------------------------------------------------
# Kernel
# ---------------------------------------------------------------------------
def _basic_block_kernel(x_ref, band1_ref, band2_ref, chan_avg_ref, consts_ref,
                        mask_ref, out_ref, *, inv_count, eps, downsample_flag):
    f32 = jnp.float32
    nh = x_ref.shape[0]
    wc = out_ref.shape[-1]                      # W * Cout (= 128 for the demo)
    cdt = band1_ref.dtype                       # matmul operand dtype

    not_top = mask_ref[:, 0:1]                  # [NH,1] 0.0 on first row of image
    not_bot = mask_ref[:, 1:2]                  # [NH,1] 0.0 on last  row of image
    chan_avg = chan_avg_ref[...]                # [WC,WC] 0/1 same-channel matrix

    def build_lhs(a):
        # Vertical im2col: lane-concat of [row y-1 | row y | row y+1] copies.
        # Rolls run on the XLU; image-boundary / wraparound rows are zeroed by
        # the row masks (VPU).  Pieces are 128-lane aligned by construction.
        up = pltpu.roll(a, 1, axis=0) * not_top          # row y <- a[y-1]
        dn = pltpu.roll(a, nh - 1, axis=0) * not_bot     # row y <- a[y+1]
        return jnp.concatenate([up, a, dn], axis=1).astype(cdt)

    def batch_norm(acc, g_row, be_row):
        # Training-mode BN, biased variance, centered two-pass for stability.
        # chan_avg folds per-lane sums into per-channel sums already replicated
        # back across the W positions (no separate expand matmul / tile).
        s = jnp.sum(acc, axis=0, keepdims=True)                       # [1,WC]
        mean_row = jnp.dot(s, chan_avg, preferred_element_type=f32) * inv_count
        cen = acc - mean_row
        ss = jnp.sum(cen * cen, axis=0, keepdims=True)
        var_row = jnp.dot(ss, chan_avg, preferred_element_type=f32) * inv_count
        scale_row = g_row * lax.rsqrt(var_row + eps)
        return cen * scale_row + be_row                               # one FMA

    x32 = x_ref[...].astype(f32)

    # conv1 (3x3, s=1, p=1).  Conv bias omitted: cancels under train-mode BN.
    # If downsample_flag, the same matmul also computes the 1x1 projection in
    # output columns [wc, 2*wc).
    res1 = jnp.dot(build_lhs(x32), band1_ref[...], preferred_element_type=f32)
    out1 = jnp.maximum(
        batch_norm(res1[:, :wc], consts_ref[0:1, :], consts_ref[1:2, :]), 0.0)

    # conv2 (3x3, s=1, p=1) + bn2
    acc2 = jnp.dot(build_lhs(out1), band2_ref[...], preferred_element_type=f32)
    out2 = batch_norm(acc2, consts_ref[2:3, :], consts_ref[3:4, :])

    # residual branch
    if downsample_flag:
        identity = res1[:, wc:] + consts_ref[4:5, :]        # fused 1x1 + bias
    else:
        identity = x32[:, :wc]                              # lanes coincide

    out_ref[...] = jnp.maximum(out2 + identity, 0.0)        # lane-dense [NH, WC]


# ---------------------------------------------------------------------------
# Wrapper: banded-weight construction + pallas_call
# ---------------------------------------------------------------------------
def _conv_band(w, W, ci_pad):
    """w: [3, 3, ci, co] (HWIO).  Returns the fused vertical-im2col band
    [3 * W * ci_pad, W * co].  The horizontal boundary (padding=1 in W) is
    handled by dropping out-of-image taps, so no halo lanes are ever needed."""
    ci, co = w.shape[2], w.shape[3]
    wp = jnp.zeros((3, 3, ci_pad, co), w.dtype).at[:, :, :ci, :].set(w)
    taps = []
    for ky in range(3):
        b = jnp.zeros((W * ci_pad, W * co), w.dtype)
        for kx in range(3):
            # input x position xi = xo + kx - 1  ->  ones on diagonal k = 1-kx
            b = b + jnp.kron(jnp.eye(W, k=1 - kx, dtype=w.dtype), wp[ky, kx])
        taps.append(b)
    return jnp.concatenate(taps, axis=0)


def basic_block(x_nchw, params, *, downsample_flag=True, stride=1, eps=1e-5,
                compute_dtype=jnp.bfloat16):
    """x_nchw: [N, Cin, H, W] float32 (PyTorch layout). Returns [N, Cout, H, W]."""
    assert stride == 1, "TODO(synk): stride > 1 not implemented in this kernel"
    x = jnp.transpose(x_nchw, (0, 2, 3, 1))            # NHWC for lane-dense slabs
    N, H, W, Cin = x.shape
    Cout = params["w1"].shape[-1]
    NH, WC = N * H, W * Cout
    assert WC % 128 == 0, "lane-dense layout requires W*Cout % 128 == 0"
    f32 = jnp.float32
    cdt = compute_dtype

    # Pad Cin so each per-tap lane block is 128-aligned (keeps the in-kernel
    # lane concat and the MXU K dimension vreg-aligned).
    cin_p = Cin
    while (W * cin_p) % 128 != 0:
        cin_p += 1

    # lane-dense input slab: row = (n, y), lanes = (x position, channel)
    x_p = x if cin_p == Cin else jnp.pad(x, ((0, 0), (0, 0), (0, 0),
                                             (0, cin_p - Cin)))
    x_slab = x_p.reshape(NH, W * cin_p).astype(cdt)

    # fused conv1 band (+ fused 1x1 downsample columns)
    band1 = _conv_band(params["w1"].astype(f32), W, cin_p)     # [3*W*cin_p, WC]
    if downsample_flag:
        wdp = jnp.zeros((cin_p, Cout), f32).at[:Cin].set(params["wd"])
        bd_mid = jnp.kron(jnp.eye(W, dtype=f32), wdp)          # middle tap only
        bd_cols = jnp.concatenate(
            [jnp.zeros_like(bd_mid), bd_mid, jnp.zeros_like(bd_mid)], axis=0)
        band1 = jnp.concatenate([band1, bd_cols], axis=1)      # [3*W*cin_p, 2*WC]
    else:
        assert Cin == Cout and cin_p == Cin, \
            "identity path requires inplanes == planes"
    band1 = band1.astype(cdt)
    band2 = _conv_band(params["w2"].astype(f32), W, Cout).astype(cdt)

    # per-channel fold matrix (0/1 "same channel" matrix, lane-replicated fold)
    lane = jnp.arange(WC)
    chan_avg = (lane[:, None] % Cout == lane[None, :] % Cout).astype(f32)

    # packed gamma/beta/bias rows (channel-replicated across the W positions).
    # Conv biases b1/b2 are intentionally NOT passed: a per-channel bias before
    # a training-mode BatchNorm is exactly cancelled by the mean subtraction.
    tile_row = lambda p: jnp.tile(p.reshape(1, -1).astype(f32), (1, W))
    consts = jnp.zeros((8, WC), f32)
    consts = consts.at[0:1].set(tile_row(params["g1"]))
    consts = consts.at[1:2].set(tile_row(params["be1"]))
    consts = consts.at[2:3].set(tile_row(params["g2"]))
    consts = consts.at[3:4].set(tile_row(params["be2"]))
    if downsample_flag:
        consts = consts.at[4:5].set(tile_row(params["bd"]))

    # image-boundary row masks for the vertical rolls
    y = jnp.arange(NH) % H
    row_mask = jnp.stack([(y != 0), (y != H - 1)], axis=1).astype(f32)  # [NH,2]

    kernel = functools.partial(
        _basic_block_kernel,
        inv_count=1.0 / float(N * H * W), eps=eps,
        downsample_flag=downsample_flag)

    vmem = pl.BlockSpec(memory_space=pltpu.MemorySpace.VMEM)
    out2d = pl.pallas_call(
        kernel,
        out_shape=jax.ShapeDtypeStruct((NH, WC), f32),
        in_specs=[vmem] * 6,
        out_specs=vmem,
        # Demo shapes fit easily; re-derive per generation once an NH grid is
        # added (64 MiB physical VMEM on v7x).
        compiler_params=pltpu.CompilerParams(vmem_limit_bytes=32 * 1024 * 1024),
    )(x_slab, band1, band2, chan_avg, consts, row_mask)

    out = out2d.reshape(N, H, W, Cout)
    return jnp.transpose(out, (0, 3, 1, 2))            # back to NCHW


# ---------------------------------------------------------------------------
# Pure-JAX reference (same math, incl. the conv biases that cancel under BN)
# ---------------------------------------------------------------------------
def basic_block_ref(x_nchw, params, *, downsample_flag=True, eps=1e-5):
    x = jnp.transpose(x_nchw, (0, 2, 3, 1))

    def conv3x3(inp, w, b):
        y = lax.conv_general_dilated(
            inp, w, window_strides=(1, 1), padding=((1, 1), (1, 1)),
            dimension_numbers=("NHWC", "HWIO", "NHWC"),
            precision=lax.Precision.HIGHEST)
        return y + b.reshape(1, 1, 1, -1)

    def bn(y, g, be):
        mean = jnp.mean(y, axis=(0, 1, 2), keepdims=True)
        var = jnp.mean((y - mean) ** 2, axis=(0, 1, 2), keepdims=True)
        return ((y - mean) * lax.rsqrt(var + eps) * g.reshape(1, 1, 1, -1)
                + be.reshape(1, 1, 1, -1))

    out = jnp.maximum(
        bn(conv3x3(x, params["w1"], params["b1"]), params["g1"], params["be1"]),
        0.0)
    out = bn(conv3x3(out, params["w2"], params["b2"]),
             params["g2"], params["be2"])
    if downsample_flag:
        identity = (jnp.einsum("nhwc,cd->nhwd", x, params["wd"],
                               precision=lax.Precision.HIGHEST)
                    + params["bd"].reshape(1, 1, 1, -1))
    else:
        identity = x
    out = jnp.maximum(out + identity, 0.0)
    return jnp.transpose(out, (0, 3, 1, 2))


def init_params(key, cin, cout):
    ks = jax.random.split(key, 10)
    n = jax.random.normal
    return {
        "w1": 0.1 * n(ks[0], (3, 3, cin, cout), jnp.float32),
        "b1": 0.1 * n(ks[1], (cout,), jnp.float32),
        "g1": 1.0 + 0.1 * n(ks[2], (cout,), jnp.float32),
        "be1": 0.1 * n(ks[3], (cout,), jnp.float32),
        "w2": 0.1 * n(ks[4], (3, 3, cout, cout), jnp.float32),
        "b2": 0.1 * n(ks[5], (cout,), jnp.float32),
        "g2": 1.0 + 0.1 * n(ks[6], (cout,), jnp.float32),
        "be2": 0.1 * n(ks[7], (cout,), jnp.float32),
        "wd": 0.1 * n(ks[8], (cin, cout), jnp.float32),
        "bd": 0.1 * n(ks[9], (cout,), jnp.float32),
    }


if __name__ == "__main__":
    # BasicBlock(inplanes=4, planes=8, stride=1, downsample_flag=True)
    N, H, W, Cin, Cout = 2, 16, 16, 4, 8
    key = jax.random.PRNGKey(0)
    kx, kp, kp2, kx2 = jax.random.split(key, 4)

    x = jax.random.normal(kx, (N, Cin, H, W), jnp.float32)       # NCHW
    params = init_params(kp, Cin, Cout)
    ref = basic_block_ref(x, params, downsample_flag=True)

    # f32 compute path (algorithmic check)
    out32 = jax.block_until_ready(
        basic_block(x, params, downsample_flag=True, stride=1,
                    compute_dtype=jnp.float32))
    assert out32.shape == (N, Cout, H, W)
    err32 = float(jnp.max(jnp.abs(out32 - ref)))
    assert jnp.allclose(out32, ref, atol=1e-2, rtol=1e-2), err32

    # bf16 MXU-operand fast path (default); loose tolerance for bf16 rounding
    # through two convs + residual.
    out16 = jax.block_until_ready(
        basic_block(x, params, downsample_flag=True, stride=1,
                    compute_dtype=jnp.bfloat16))
    err16 = float(jnp.max(jnp.abs(out16 - ref)))
    assert jnp.allclose(out16, ref, atol=1e-1, rtol=1e-1), err16

    # identity (no-downsample) path requires Cin == Cout
    params_id = init_params(kp2, Cout, Cout)
    x_id = jax.random.normal(kx2, (N, Cout, H, W), jnp.float32)
    out_id = jax.block_until_ready(
        basic_block(x_id, params_id, downsample_flag=False, stride=1,
                    compute_dtype=jnp.float32))
    ref_id = basic_block_ref(x_id, params_id, downsample_flag=False)
    err_id = float(jnp.max(jnp.abs(out_id - ref_id)))
    assert jnp.allclose(out_id, ref_id, atol=1e-2, rtol=1e-2), err_id

    print("KERNEL_OK")
</pallas_src>

<mosaic_0001>
module attributes {stable_mosaic.version = 11 : i64} {
  func.func @_basic_block_kernel(%arg0: memref<32x128xf32, #tpu.memory_space<vmem>>, %arg1: memref<384x256xf32, #tpu.memory_space<vmem>>, %arg2: memref<384x128xf32, #tpu.memory_space<vmem>>, %arg3: memref<128x128xf32, #tpu.memory_space<vmem>>, %arg4: memref<8x128xf32, #tpu.memory_space<vmem>>, %arg5: memref<32x2xf32, #tpu.memory_space<vmem>>, %arg6: memref<32x128xf32, #tpu.memory_space<vmem>>) attributes {dimension_semantics = [], scalar_prefetch = 0 : i64, scratch_operands = 0 : i64, tpu.core_type = #tpu.core_type<tc>} {
    %c0 = arith.constant 0 : index
    %c0_0 = arith.constant 0 : index
    %0 = vector.load %arg5[%c0, %c0_0] : memref<32x2xf32, #tpu.memory_space<vmem>>, vector<32x1xf32>
    %c0_1 = arith.constant 0 : index
    %c1 = arith.constant 1 : index
    %1 = vector.load %arg5[%c0_1, %c1] : memref<32x2xf32, #tpu.memory_space<vmem>>, vector<32x1xf32>
    %c0_2 = arith.constant 0 : index
    %c0_3 = arith.constant 0 : index
    %2 = vector.load %arg3[%c0_2, %c0_3] : memref<128x128xf32, #tpu.memory_space<vmem>>, vector<128x128xf32>
    %c0_4 = arith.constant 0 : index
    %c0_5 = arith.constant 0 : index
    %3 = vector.load %arg0[%c0_4, %c0_5] : memref<32x128xf32, #tpu.memory_space<vmem>>, vector<32x128xf32>
    %c1_i32 = arith.constant 1 : i32
    %4 = tpu.dynamic_rotate %3 by %c1_i32 dim 0 : vector<32x128xf32>, i32 -> vector<32x128xf32>
    %5 = vector.broadcast %0 : vector<32x1xf32> to vector<32x128xf32>
    %6 = arith.mulf %4, %5 : vector<32x128xf32>
    %c31_i32 = arith.constant 31 : i32
    %7 = tpu.dynamic_rotate %3 by %c31_i32 dim 0 : vector<32x128xf32>, i32 -> vector<32x128xf32>
    %8 = vector.broadcast %1 : vector<32x1xf32> to vector<32x128xf32>
    %9 = arith.mulf %7, %8 : vector<32x128xf32>
    %10 = tpu.concatenate %6, %3, %9 in 1 : vector<32x128xf32>, vector<32x128xf32>, vector<32x128xf32> -> vector<32x384xf32>
    %c0_6 = arith.constant 0 : index
    %c0_7 = arith.constant 0 : index
    %11 = vector.load %arg1[%c0_6, %c0_7] : memref<384x256xf32, #tpu.memory_space<vmem>>, vector<384x256xf32>
    %cst = arith.constant dense<0.000000e+00> : vector<32x256xf32>
    %12 = tpu.matmul %10, %11, %cst {dimension_numbers = #tpu.dot_dimension_numbers<[1], [0], [0], [1], [0, 0, 1, 1], [], []>} : vector<32x384xf32>, vector<384x256xf32>, vector<32x256xf32> -> vector<32x256xf32>
    %13 = vector.extract_strided_slice %12 {offsets = [0, 0], sizes = [32, 128], strides = [1, 1]} : vector<32x256xf32> to vector<32x128xf32>
    %c0_8 = arith.constant 0 : index
    %c0_9 = arith.constant 0 : index
    %14 = vector.load %arg4[%c0_8, %c0_9] : memref<8x128xf32, #tpu.memory_space<vmem>>, vector<1x128xf32>
    %c1_10 = arith.constant 1 : index
    %c0_11 = arith.constant 0 : index
    %15 = vector.load %arg4[%c1_10, %c0_11] : memref<8x128xf32, #tpu.memory_space<vmem>>, vector<1x128xf32>
    %cst_12 = arith.constant dense<0.000000e+00> : vector<128xf32>
    %16 = vector.multi_reduction <add>, %13, %cst_12 [0] : vector<32x128xf32> to vector<128xf32>
    %17 = vector.shape_cast %16 : vector<128xf32> to vector<1x128xf32>
    %cst_13 = arith.constant dense<0.000000e+00> : vector<1x128xf32>
    %18 = tpu.matmul %17, %2, %cst_13 {dimension_numbers = #tpu.dot_dimension_numbers<[1], [0], [0], [1], [0, 0, 1, 1], [], []>} : vector<1x128xf32>, vector<128x128xf32>, vector<1x128xf32> -> vector<1x128xf32>
    %cst_14 = arith.constant 0.001953125 : f32
    %19 = vector.broadcast %cst_14 : f32 to vector<1x128xf32>
    %20 = arith.mulf %18, %19 : vector<1x128xf32>
    %21 = vector.broadcast %20 : vector<1x128xf32> to vector<32x128xf32>
    %22 = arith.subf %13, %21 : vector<32x128xf32>
    %23 = arith.mulf %22, %22 : vector<32x128xf32>
    %cst_15 = arith.constant dense<0.000000e+00> : vector<128xf32>
    %24 = vector.multi_reduction <add>, %23, %cst_15 [0] : vector<32x128xf32> to vector<128xf32>
    %25 = vector.shape_cast %24 : vector<128xf32> to vector<1x128xf32>
    %cst_16 = arith.constant dense<0.000000e+00> : vector<1x128xf32>
    %26 = tpu.matmul %25, %2, %cst_16 {dimension_numbers = #tpu.dot_dimension_numbers<[1], [0], [0], [1], [0, 0, 1, 1], [], []>} : vector<1x128xf32>, vector<128x128xf32>, vector<1x128xf32> -> vector<1x128xf32>
    %cst_17 = arith.constant 0.001953125 : f32
    %27 = vector.broadcast %cst_17 : f32 to vector<1x128xf32>
    %28 = arith.mulf %26, %27 : vector<1x128xf32>
    %cst_18 = arith.constant 9.99999974E-6 : f32
    %29 = vector.broadcast %cst_18 : f32 to vector<1x128xf32>
    %30 = arith.addf %28, %29 : vector<1x128xf32>
    %31 = math.rsqrt %30 : vector<1x128xf32>
    %32 = arith.mulf %14, %31 : vector<1x128xf32>
    %33 = vector.broadcast %32 : vector<1x128xf32> to vector<32x128xf32>
    %34 = arith.mulf %22, %33 : vector<32x128xf32>
    %35 = vector.broadcast %15 : vector<1x128xf32> to vector<32x128xf32>
    %36 = arith.addf %34, %35 : vector<32x128xf32>
    %cst_19 = arith.constant 0.000000e+00 : f32
    %37 = vector.broadcast %cst_19 : f32 to vector<32x128xf32>
    %38 = arith.maximumf %36, %37 : vector<32x128xf32>
    %c1_i32_20 = arith.constant 1 : i32
    %39 = tpu.dynamic_rotate %38 by %c1_i32_20 dim 0 : vector<32x128xf32>, i32 -> vector<32x128xf32>
    %40 = vector.broadcast %0 : vector<32x1xf32> to vector<32x128xf32>
    %41 = arith.mulf %39, %40 : vector<32x128xf32>
    %c31_i32_21 = arith.constant 31 : i32
    %42 = tpu.dynamic_rotate %38 by %c31_i32_21 dim 0 : vector<32x128xf32>, i32 -> vector<32x128xf32>
    %43 = vector.broadcast %1 : vector<32x1xf32> to vector<32x128xf32>
    %44 = arith.mulf %42, %43 : vector<32x128xf32>
    %45 = tpu.concatenate %41, %38, %44 in 1 : vector<32x128xf32>, vector<32x128xf32>, vector<32x128xf32> -> vector<32x384xf32>
    %c0_22 = arith.constant 0 : index
    %c0_23 = arith.constant 0 : index
    %46 = vector.load %arg2[%c0_22, %c0_23] : memref<384x128xf32, #tpu.memory_space<vmem>>, vector<384x128xf32>
    %cst_24 = arith.constant dense<0.000000e+00> : vector<32x128xf32>
    %47 = tpu.matmul %45, %46, %cst_24 {dimension_numbers = #tpu.dot_dimension_numbers<[1], [0], [0], [1], [0, 0, 1, 1], [], []>} : vector<32x384xf32>, vector<384x128xf32>, vector<32x128xf32> -> vector<32x128xf32>
    %c2 = arith.constant 2 : index
    %c0_25 = arith.constant 0 : index
    %48 = vector.load %arg4[%c2, %c0_25] : memref<8x128xf32, #tpu.memory_space<vmem>>, vector<1x128xf32>
    %c3 = arith.constant 3 : index
    %c0_26 = arith.constant 0 : index
    %49 = vector.load %arg4[%c3, %c0_26] : memref<8x128xf32, #tpu.memory_space<vmem>>, vector<1x128xf32>
    %cst_27 = arith.constant dense<0.000000e+00> : vector<128xf32>
    %50 = vector.multi_reduction <add>, %47, %cst_27 [0] : vector<32x128xf32> to vector<128xf32>
    %51 = vector.shape_cast %50 : vector<128xf32> to vector<1x128xf32>
    %cst_28 = arith.constant dense<0.000000e+00> : vector<1x128xf32>
    %52 = tpu.matmul %51, %2, %cst_28 {dimension_numbers = #tpu.dot_dimension_numbers<[1], [0], [0], [1], [0, 0, 1, 1], [], []>} : vector<1x128xf32>, vector<128x128xf32>, vector<1x128xf32> -> vector<1x128xf32>
    %cst_29 = arith.constant 0.001953125 : f32
    %53 = vector.broadcast %cst_29 : f32 to vector<1x128xf32>
    %54 = arith.mulf %52, %53 : vector<1x128xf32>
    %55 = vector.broadcast %54 : vector<1x128xf32> to vector<32x128xf32>
    %56 = arith.subf %47, %55 : vector<32x128xf32>
    %57 = arith.mulf %56, %56 : vector<32x128xf32>
    %cst_30 = arith.constant dense<0.000000e+00> : vector<128xf32>
    %58 = vector.multi_reduction <add>, %57, %cst_30 [0] : vector<32x128xf32> to vector<128xf32>
    %59 = vector.shape_cast %58 : vector<128xf32> to vector<1x128xf32>
    %cst_31 = arith.constant dense<0.000000e+00> : vector<1x128xf32>
    %60 = tpu.matmul %59, %2, %cst_31 {dimension_numbers = #tpu.dot_dimension_numbers<[1], [0], [0], [1], [0, 0, 1, 1], [], []>} : vector<1x128xf32>, vector<128x128xf32>, vector<1x128xf32> -> vector<1x128xf32>
    %cst_32 = arith.constant 0.001953125 : f32
    %61 = vector.broadcast %cst_32 : f32 to vector<1x128xf32>
    %62 = arith.mulf %60, %61 : vector<1x128xf32>
    %cst_33 = arith.constant 9.99999974E-6 : f32
    %63 = vector.broadcast %cst_33 : f32 to vector<1x128xf32>
    %64 = arith.addf %62, %63 : vector<1x128xf32>
    %65 = math.rsqrt %64 : vector<1x128xf32>
    %66 = arith.mulf %48, %65 : vector<1x128xf32>
    %67 = vector.broadcast %66 : vector<1x128xf32> to vector<32x128xf32>
    %68 = arith.mulf %56, %67 : vector<32x128xf32>
    %69 = vector.broadcast %49 : vector<1x128xf32> to vector<32x128xf32>
    %70 = arith.addf %68, %69 : vector<32x128xf32>
    %71 = vector.extract_strided_slice %12 {offsets = [0, 128], sizes = [32, 128], strides = [1, 1]} : vector<32x256xf32> to vector<32x128xf32>
    %c4 = arith.constant 4 : index
    %c0_34 = arith.constant 0 : index
    %72 = vector.load %arg4[%c4, %c0_34] : memref<8x128xf32, #tpu.memory_space<vmem>>, vector<1x128xf32>
    %73 = vector.broadcast %72 : vector<1x128xf32> to vector<32x128xf32>
    %74 = arith.addf %71, %73 : vector<32x128xf32>
    %75 = arith.addf %70, %74 : vector<32x128xf32>
    %cst_35 = arith.constant 0.000000e+00 : f32
    %76 = vector.broadcast %cst_35 : f32 to vector<32x128xf32>
    %77 = arith.maximumf %75, %76 : vector<32x128xf32>
    %c0_36 = arith.constant 0 : index
    %c0_37 = arith.constant 0 : index
    %78 = vector.load %arg6[%c0_36, %c0_37] : memref<32x128xf32, #tpu.memory_space<vmem>>, vector<32x128xf32>
    tpu.vector_store %arg6[%c0_36, %c0_37], %77 {strides = array<i32>} : memref<32x128xf32, #tpu.memory_space<vmem>>, vector<32x128xf32>,
    return
  }
}

</mosaic_0001>

<bundles_post_ra>
// kernel: tpu_custom_call.1
= control target key start
LH: loop header
LB: loop body
LE: loop exit
PB: predicated region body
PF: predicated region fallthrough
CT: control target
= control target key end

     0   :  { %11 = vsyncpa [#allocation3], 0  ;;  %s2153_s0 = inlined_call_operand.vmem [shape: f32[32,128], index: 0, kind: input, shape index: {}]   ;;  %s2154_s1 = inlined_call_operand.hbm [shape: f32[384,256], index: 1, kind: input, shape index: {}]   ;;  %s2155_s2 = inlined_call_operand.hbm [shape: f32[384,128], index: 2, kind: input, shape index: {}]   ;;  %s2156_s3 = inlined_call_operand.hbm [shape: f32[128,128], index: 3, kind: input, shape index: {}]   ;;  %s2157_s4 = inlined_call_operand.vmem [shape: f32[8,128], index: 4, kind: input, shape index: {}]   ;;  %s2158_s5 = inlined_call_operand.vmem [shape: f32[32,2], index: 5, kind: input, shape index: {}]   ;;  %s2159_s6 = inlined_call_operand.hbm [shape: f32[32,128], index: 6, kind: output, shape index: {}]  }
   0x1   :  { %12 = vsyncpa [#allocation6], 0 }
   0x2   :  { %13 = vsyncpa [#allocation4], 0  ;;  %s1790_s21 = smov [#allocation5]   ;;  %s1696_s25 = scalar_lea.hbm %s2155_s2, 6144 }
   0x3   :  { %s33_s22 = sshll.u32 %s1790_s21, 4  ;;  %p1697_p0 = scmp.ne.s32.totalorder %s2155_s2, %s1696_s25  ;;  %s34_s22 = int_to_ptr.vmem [resolvable:$true] %s33_s22 }
   0x4   :  { %p1700_p1 = scmp.lt.u32.totalorder %s1696_s25, %s2155_s2 }
   0x6   :  { %p1702_p2 = pnand %p1700_p1, %p1697_p0 }
   0x8   :  { %1705 = shalt.err (!%p1702_p2)
}
   0x9   :  { %s1706_s30 = scalar_lea.vmem %s34_s22, 6144  ;;  %p1711_p4 = scmp.lt.s32.totalorder %s34_s22, %s34_s22 }
   0xa   :  { %p1707_p3 = scmp.ne.s32.totalorder %s34_s22, %s1706_s30  ;;  %p1712_p5 = scmp.lt.s32.totalorder %s1706_s30, %s1706_s30 }
   0xc   :  { %p1713_p6 = por %p1712_p5, %p1711_p4 }
   0xe   :  { %p1714_p7 = pnand %p1713_p6, %p1707_p3 }
  0x10   :  { %1717 = shalt.err (!%p1714_p7)
}
  0x11   :  { %s1791_s7 = smov 128   ;;  %s1792_s8 = smov 8  }
  0x12   :  { %39 = dma.hbm_to_vmem [thread:$0]  %s2155_s2, 6144, %s34_s22, [#allocation6], %s1791_s7, %s1791_s7, %s1792_s8  }
  0x13   :  { %s1793_s11 = smov [#allocation2]   ;;  %s1718_s15 = scalar_lea.hbm %s2154_s1, 12288 }
  0x14   :  { %s21_s12 = sshll.u32 %s1793_s11, 4  ;;  %p1719_p8 = scmp.ne.s32.totalorder %s2154_s1, %s1718_s15  ;;  %s22_s12 = int_to_ptr.vmem [resolvable:$true] %s21_s12 }
  0x15   :  { %p1722_p9 = scmp.lt.u32.totalorder %s1718_s15, %s2154_s1 }
  0x17   :  { %p1724_p10 = pnand %p1722_p9, %p1719_p8 }
  0x19   :  { %1727 = shalt.err (!%p1724_p10)
}
  0x1a   :  { %s1728_s20 = scalar_lea.vmem %s22_s12, 12288  ;;  %p1733_p12 = scmp.lt.s32.totalorder %s22_s12, %s22_s12 }
  0x1b   :  { %p1729_p11 = scmp.ne.s32.totalorder %s22_s12, %s1728_s20  ;;  %p1734_p13 = scmp.lt.s32.totalorder %s1728_s20, %s1728_s20 }
  0x1d   :  { %p1735_p0 = por %p1734_p13, %p1733_p12 }
  0x1f   :  { %p1736_p1 = pnand %p1735_p0, %p1729_p11 }
  0x21   :  { %1739 = shalt.err (!%p1736_p1)
}
  0x22   :  { %s1794_s2 = smov 256   ;;  %s1795_s21 = smov 16  }
  0x23   :  { %27 = dma.hbm_to_vmem [thread:$0]  %s2154_s1, 12288, %s22_s12, [#allocation3], %s1794_s2, %s1794_s2, %s1795_s21  }
  0x24   :  { %s1796_s24 = smov [#allocation7]   ;;  %s1740_s28 = scalar_lea.hbm %s2156_s3, 2048 }
  0x25   :  { %s45_s25 = sshll.u32 %s1796_s24, 4  ;;  %p1741_p2 = scmp.ne.s32.totalorder %s2156_s3, %s1740_s28  ;;  %s46_s25 = int_to_ptr.vmem [resolvable:$true] %s45_s25 }
  0x26   :  { %p1744_p3 = scmp.lt.u32.totalorder %s1740_s28, %s2156_s3 }
  0x28   :  { %p1746_p4 = pnand %p1744_p3, %p1741_p2 }
  0x2a   :  { %1749 = shalt.err (!%p1746_p4)
}
  0x2b   :  { %s1750_s11 = scalar_lea.vmem %s46_s25, 2048  ;;  %p1755_p6 = scmp.lt.s32.totalorder %s46_s25, %s46_s25 }
  0x2c   :  { %p1751_p5 = scmp.ne.s32.totalorder %s46_s25, %s1750_s11  ;;  %p1756_p7 = scmp.lt.s32.totalorder %s1750_s11, %s1750_s11 }
  0x2e   :  { %p1757_p8 = por %p1756_p7, %p1755_p6 }
  0x30   :  { %p1758_p9 = pnand %p1757_p8, %p1751_p5 }
  0x32   :  { %1761 = shalt.err (!%p1758_p9)
}
  0x33   :  { %51 = dma.hbm_to_vmem [thread:$0]  %s2156_s3, 2048, %s46_s25, [#allocation6], %s1791_s7, %s1791_s7, %s1792_s8  }
  0x34   :  { %1784 = dma.done.wait [#allocation3], 12288  }
  0x35   :  { %1785 = vsyncadd [#allocation3], 4294955008 }
  0x36   :  { %1786 = dma.done.wait [#allocation6], 8192  }
  0x37   :  { %1787 = vsyncadd [#allocation6], 4294959104  ;;  %v1797_v0 = vmov 0   ;;  %v65_v1 = vld [vmem:[%s2158_s5] sm:$0xff]  ;;  %v66_v2 = vld [vmem:[%s2158_s5 + $0x8] sm:$0xff]  ;;  %v1798_v22 = vmov 1  }
  0x38   :  { %1688 = vset.pattern.permute.xlu0 %v1797_v0  ;;  %1689 = vset.pattern.permute.xlu1 %v1797_v0  ;;  %v67_v3 = vld [vmem:[%s2158_s5 + $0x10] sm:$0xff]  ;;  %v68_v4 = vld [vmem:[%s2158_s5 + $0x18] sm:$0xff]  ;;  %v154_v5 = vld [vmem:[#allocation2 + $0x8] sm:$0xff]  ;;  %vm1801_vm2 = vmmov 0   ;;  %s1802_s12 = smov [#allocation8]  }
  0x39   :  { %102 = vperm.xlu0 %1688, %v65_v1   ;;  %112 = vperm.xlu1 %1689, %v67_v3   ;;  %v156_v6 = vld [vmem:[#allocation2 + $0x18] sm:$0xff]  ;;  %v153_v8 = vld [vmem:[#allocation2] sm:$0xff]  ;;  %v155_v9 = vld [vmem:[#allocation2 + $0x10] sm:$0xff]  ;;  %s1085_s13 = sshll.u32 %s1802_s12, 4  ;;  %s1086_s13 = int_to_ptr.vmem [resolvable:$true] %s1085_s13 }
  0x3a   :  { %v1411_v7 = vpack.c.bf16 %v156_v6, %v154_v5  ;;  %v158_v10 = vld [vmem:[#allocation2 + $0x28] sm:$0xff]  ;;  %v1413_v11 = vpack.c.bf16 %v155_v9, %v153_v8  ;;  %v160_v12 = vld [vmem:[#allocation2 + $0x38] sm:$0xff]  ;;  %v157_v14 = vld [vmem:[#allocation2 + $0x20] sm:$0xff]  ;;  %p1767_p11 = scmp.lt.s32.totalorder %s1086_s13, %s1086_s13 }
  0x3b   :  { %v1415_v13 = vpack.c.bf16 %v160_v12, %v158_v10  ;;  %v159_v15 = vld [vmem:[#allocation2 + $0x30] sm:$0xff]  ;;  %v162_v16 = vld [vmem:[#allocation2 + $0x48] sm:$0xff]  ;;  %v164_v17 = vld [vmem:[#allocation2 + $0x58] sm:$0xff] }
  0x3c   :  { %1412 = vmatprep.subr.bf16.mxu0 %v1411_v7  ;;  %v1417_v18 = vpack.c.bf16 %v159_v15, %v157_v14  ;;  %v1419_v19 = vpack.c.bf16 %v164_v17, %v162_v16  ;;  %v161_v20 = vld [vmem:[#allocation2 + $0x40] sm:$0xff]  ;;  %v163_v21 = vld [vmem:[#allocation2 + $0x50] sm:$0xff]  ;;  %v166_v23 = vld [vmem:[#allocation2 + $0x68] sm:$0xff] }
  0x3d   :  { %107 = vperm.xlu0 %1688, %v66_v2   ;;  %117 = vperm.xlu1 %1689, %v68_v4   ;;  %v168_v24 = vld [vmem:[#allocation2 + $0x78] sm:$0xff]  ;;  %v1421_v25 = vpack.c.bf16 %v163_v21, %v161_v20  ;;  %v165_v27 = vld [vmem:[#allocation2 + $0x60] sm:$0xff]  ;;  %v167_v28 = vld [vmem:[#allocation2 + $0x70] sm:$0xff] }
  0x3e   :  { %1414 = vmatpush1.bf16.msra.mxu0 %v1413_v11  ;;  %v1423_v26 = vpack.c.bf16 %v168_v24, %v166_v23  ;;  %v170_v29 = vld [vmem:[#allocation2 + $0x88] sm:$0xff]  ;;  %v172_v30 = vld [vmem:[#allocation2 + $0x98] sm:$0xff]  ;;  %v1425_v31 = vpack.c.bf16 %v167_v28, %v165_v27  ;;  %v169_v33 = vld [vmem:[#allocation2 + $0x80] sm:$0xff] }
  0x3f   :  { %1416 = vmatprep.subr.bf16.mxu0 %v1415_v13  ;;  %v1427_v32 = vpack.c.bf16 %v172_v30, %v170_v29  ;;  %v171_v34 = vld [vmem:[#allocation2 + $0x90] sm:$0xff]  ;;  %v174_v35 = vld [vmem:[#allocation2 + $0xa8] sm:$0xff]  ;;  %v176_v36 = vld [vmem:[#allocation2 + $0xb8] sm:$0xff] }
  0x40   :  { %v1429_v37 = vpack.c.bf16 %v171_v34, %v169_v33  ;;  %v1431_v38 = vpack.c.bf16 %v176_v36, %v174_v35  ;;  %v173_v39 = vld [vmem:[#allocation2 + $0xa0] sm:$0xff]  ;;  %v175_v40 = vld [vmem:[#allocation2 + $0xb0] sm:$0xff]  ;;  %v178_v41 = vld [vmem:[#allocation2 + $0xc8] sm:$0xff] }
  0x41   :  { %1690 = vset.pattern.permute.xlu0 %v1798_v22  ;;  %1691 = vset.pattern.permute.xlu1 %v1798_v22  ;;  %v180_v42 = vld [vmem:[#allocation2 + $0xd8] sm:$0xff]  ;;  %v1895_v43 = vld [vmem:[%s2153_s0] sm:$0xff]  ;;  %v1433_v44 = vpack.c.bf16 %v175_v40, %v173_v39  ;;  %v179_v47 = vld [vmem:[#allocation2 + $0xd0] sm:$0xff]  ;;  %v1799_v22 = vmov 0.0|0.0  }
  0x42   :  { %134 = vperm.xlu0 %1690, %v65_v1   ;;  %138 = vperm.xlu1 %1691, %v66_v2   ;;  %v1435_v45 = vpack.c.bf16 %v180_v42, %v178_v41  ;;  %v177_v46 = vld [vmem:[#allocation2 + $0xc0] sm:$0xff]  ;;  %v182_v48 = vld [vmem:[#allocation2 + $0xe8] sm:$0xff]  ;;  %v184_v49 = vld [vmem:[#allocation2 + $0xf8] sm:$0xff] }
  0x43   :  { %1418 = vmatpush1.bf16.msra.mxu0 %v1417_v18  ;;  %313 = vmatprep.mubr.f32.mxu0 %v1895_v43  ;;  %v1437_v50 = vpack.c.bf16 %v179_v47, %v177_v46  ;;  %v1439_v51 = vpack.c.bf16 %v184_v49, %v182_v48  ;;  %v181_v52 = vld [vmem:[#allocation2 + $0xe0] sm:$0xff]  ;;  %v183_v53 = vld [vmem:[#allocation2 + $0xf0] sm:$0xff]  ;;  %v186_v54 = vld [vmem:[#allocation2 + $0x108] sm:$0xff]  ;;  %v93_v47 = vlaneseq }
  0x44   :  { %1420 = vmatprep.subr.bf16.mxu0 %v1419_v19  ;;  %v188_v55 = vld [vmem:[#allocation2 + $0x118] sm:$0xff]  ;;  %v1441_v56 = vpack.c.bf16 %v183_v53, %v181_v52  ;;  %v185_v58 = vld [vmem:[#allocation2 + $0x100] sm:$0xff]  ;;  %v187_v59 = vld [vmem:[#allocation2 + $0x110] sm:$0xff]  ;;  %1507 = vmatprep.subr.bf16.mxu1 %v1799_v22 }
  0x45   :  { %v1443_v57 = vpack.c.bf16 %v188_v55, %v186_v54  ;;  %v190_v60 = vld [vmem:[#allocation2 + $0x128] sm:$0xff]  ;;  %v192_v61 = vld [vmem:[#allocation2 + $0x138] sm:$0xff]  ;;  %v1445_v62 = vpack.c.bf16 %v187_v59, %v185_v58  ;;  %v189_v0 = vld [vmem:[#allocation2 + $0x120] sm:$0xff]  ;;  %v1908_v49 = vshrl.u32 %v93_v47, 7 }
  0x46   :  { %146 = vperm.xlu0 %1690, %v68_v4   ;;  %142 = vperm.xlu1 %1691, %v67_v3   ;;  %v1447_v63 = vpack.c.bf16 %v192_v61, %v190_v60  ;;  %v191_v1 = vld [vmem:[#allocation2 + $0x130] sm:$0xff]  ;;  %v194_v2 = vld [vmem:[#allocation2 + $0x148] sm:$0xff]  ;;  %v196_v3 = vld [vmem:[#allocation2 + $0x158] sm:$0xff] }
  0x47   :  { %1422 = vmatpush1.bf16.msra.mxu0 %v1421_v25  ;;  %v1449_v4 = vpack.c.bf16 %v191_v1, %v189_v0  ;;  %v1451_v5 = vpack.c.bf16 %v196_v3, %v194_v2  ;;  %v193_v6 = vld [vmem:[#allocation2 + $0x140] sm:$0xff]  ;;  %v195_v7 = vld [vmem:[#allocation2 + $0x150] sm:$0xff]  ;;  %v198_v8 = vld [vmem:[#allocation2 + $0x168] sm:$0xff]  ;;  %vm95_vm0 = vcmp.lt.s32.totalorder %v1908_v49, 1  ;;  %vm128_vm1 = vcmp.lt.s32.totalorder %v1908_v49, 7 }
  0x48   :  { %1424 = vmatprep.subr.bf16.mxu0 %v1423_v26  ;;  %v200_v9 = vld [vmem:[#allocation2 + $0x178] sm:$0xff]  ;;  %v1453_v10 = vpack.c.bf16 %v195_v7, %v193_v6  ;;  %v197_v12 = vld [vmem:[#allocation2 + $0x160] sm:$0xff]  ;;  %v199_v13 = vld [vmem:[#allocation2 + $0x170] sm:$0xff] }
  0x49   :  { %v1455_v11 = vpack.c.bf16 %v200_v9, %v198_v8  ;;  %v202_v14 = vld [vmem:[#allocation2 + $0x188] sm:$0xff]  ;;  %v204_v15 = vld [vmem:[#allocation2 + $0x198] sm:$0xff]  ;;  %v1457_v16 = vpack.c.bf16 %v199_v13, %v197_v12  ;;  %v69_v17 = vld [vmem:[#allocation7] sm:$0xff] }
  0x4a   :  { %v70_v18 = vld [vmem:[#allocation7 + $0x8] sm:$0xff]  ;;  %v1459_v19 = vpack.c.bf16 %v204_v15, %v202_v14  ;;  %v201_v20 = vld [vmem:[#allocation2 + $0x180] sm:$0xff]  ;;  %v203_v21 = vld [vmem:[#allocation2 + $0x190] sm:$0xff] }
  0x4b   :  { %1426 = vmatpush1.bf16.msra.mxu0 %v1425_v31  ;;  %v1899_v23 = vpack.c.bf16 %v70_v18, %v69_v17  ;;  %v206_v24 = vld [vmem:[#allocation2 + $0x1a8] sm:$0xff]  ;;  %v208_v25 = vld [vmem:[#allocation2 + $0x1b8] sm:$0xff]  ;;  %v1461_v26 = vpack.c.bf16 %v203_v21, %v201_v20  ;;  %v205_v28 = vld [vmem:[#allocation2 + $0x1a0] sm:$0xff] }
  0x4c   :  { %1428 = vmatprep.subr.bf16.mxu0 %v1427_v32  ;;  %v1463_v27 = vpack.c.bf16 %v208_v25, %v206_v24  ;;  %v207_v29 = vld [vmem:[#allocation2 + $0x1b0] sm:$0xff]  ;;  %v210_v30 = vld [vmem:[#allocation2 + $0x1c8] sm:$0xff]  ;;  %v212_v31 = vld [vmem:[#allocation2 + $0x1d8] sm:$0xff] }
  0x4d   :  { %1509 = vmatpush3.bf16.msra.mxu1 %v1899_v23  ;;  %v1465_v32 = vpack.c.bf16 %v207_v29, %v205_v28  ;;  %v1467_v33 = vpack.c.bf16 %v212_v31, %v210_v30  ;;  %v209_v34 = vld [vmem:[#allocation2 + $0x1c0] sm:$0xff]  ;;  %v211_v35 = vld [vmem:[#allocation2 + $0x1d0] sm:$0xff]  ;;  %v214_v36 = vld [vmem:[#allocation2 + $0x1e8] sm:$0xff] }
  0x4e   :  { %1510 = vmatprep.subr.bf16.mxu1 %v1799_v22  ;;  %v213_v40 = vld [vmem:[#allocation2 + $0x1e0] sm:$0xff]  ;;  %v215_v41 = vld [vmem:[#allocation2 + $0x1f0] sm:$0xff]  ;;  %v218_v42 = vld [vmem:[#allocation2 + $0x208] sm:$0xff] }
  0x4f   :  { %1430 = vmatpush1.bf16.msra.mxu0 %v1429_v37  ;;  %v216_v37 = vld [vmem:[#allocation2 + $0x1f8] sm:$0xff]  ;;  %v1916_v52 = vld [vmem:[%s2153_s0 + $0x8] sm:$0xff]  ;;  %v217_v53 = vld [vmem:[#allocation2 + $0x200] sm:$0xff] }
  0x50   :  { %1432 = vmatprep.subr.bf16.mxu0 %v1431_v38  ;;  %v1469_v38 = vpack.c.bf16 %v211_v35, %v209_v34  ;;  %v1471_v39 = vpack.c.bf16 %v216_v37, %v214_v36  ;;  %v1906_v48 = vld [vmem:[%s2153_s0 + $0x18] sm:$0xff]  ;;  %v219_v54 = vld [vmem:[#allocation2 + $0x210] sm:$0xff]  ;;  %v222_v58 = vld [vmem:[#allocation2 + $0x228] sm:$0xff]  ;;  %v1800_v35 = vmov 0.0  }
  0x51   :  { %v1921_v55 = vld [vmem:[%s2153_s0 + $0x10] sm:$0xff]  ;;  %v224_v59 = vld [vmem:[#allocation2 + $0x238] sm:$0xff]  ;;  %v1477_v61 = vpack.c.bf16 %v219_v54, %v217_v53  ;;  %v221_v1 = vld [vmem:[#allocation2 + $0x220] sm:$0xff]  ;;  %v125_v53 = vrot.slane %v1916_v52, 1  ;;  %1265 = vmatprep.mubr.msk.f32.mxu1 %vm1801_vm2, %v1800_v35 }
  0x52   :  { %v1479_v0 = vpack.c.bf16 %v224_v59, %v222_v58  ;;  %v223_v2 = vld [vmem:[#allocation2 + $0x230] sm:$0xff]  ;;  %v225_v12 = vld [vmem:[#allocation2 + $0x240] sm:$0xff]  ;;  %v230_v14 = vld [vmem:[#allocation2 + $0x268] sm:$0xff]  ;;  %v126_v59 = vrot.slane %v1921_v55, 1 }
  0x53   :  { %1434 = vmatpush1.bf16.msra.mxu0 %v1433_v44  ;;  %v220_v44 = vld [vmem:[#allocation2 + $0x218] sm:$0xff]  ;;  %v1481_v8 = vpack.c.bf16 %v223_v2, %v221_v1  ;;  %v227_v13 = vld [vmem:[#allocation2 + $0x250] sm:$0xff]  ;;  %v229_v21 = vld [vmem:[#allocation2 + $0x260] sm:$0xff]  ;;  %v127_v1 = vrot.slane %v1906_v48, 1 }
  0x54   :  { %1436 = vmatprep.subr.bf16.mxu0 %v1435_v45  ;;  %v1473_v45 = vpack.c.bf16 %v215_v41, %v213_v40  ;;  %v1475_v46 = vpack.c.bf16 %v220_v44, %v218_v42  ;;  %v232_v15 = vld [vmem:[#allocation2 + $0x278] sm:$0xff]  ;;  %v1485_v17 = vpack.c.bf16 %v227_v13, %v225_v12  ;;  %v231_v24 = vld [vmem:[#allocation2 + $0x270] sm:$0xff]  ;;  %v234_v25 = vld [vmem:[#allocation2 + $0x288] sm:$0xff] }
  0x55   :  { %v1487_v20 = vpack.c.bf16 %v232_v15, %v230_v14  ;;  %v1489_v28 = vpack.c.bf16 %v231_v24, %v229_v21  ;;  %v233_v30 = vld [vmem:[#allocation2 + $0x280] sm:$0xff]  ;;  %v235_v31 = vld [vmem:[#allocation2 + $0x290] sm:$0xff]  ;;  %v244_v40 = vld [vmem:[#allocation2 + $0x2d8] sm:$0xff] }
  0x56   :  { %v1493_v34 = vpack.c.bf16 %v235_v31, %v233_v30  ;;  %v237_v37 = vld [vmem:[#allocation2 + $0x2a0] sm:$0xff]  ;;  %v248_v47 = vld [vmem:[#allocation2 + $0x2f8] sm:$0xff]  ;;  %v74_v12 = vld [vmem:[#allocation7 + $0x28] sm:$0xff] }
  0x57   :  { %1438 = vmatpush1.bf16.msra.mxu0 %v1437_v50  ;;  %v89_v50 = vrot.slane %v1895_v43, 7  ;;  %v241_v44 = vld [vmem:[#allocation2 + $0x2c0] sm:$0xff]  ;;  %v75_v14 = vld [vmem:[#allocation7 + $0x30] sm:$0xff]  ;;  %v76_v15 = vld [vmem:[#allocation7 + $0x38] sm:$0xff] }
  0x58   :  { %1440 = vmatprep.subr.bf16.mxu0 %v1439_v51  ;;  %v92_v51 = vrot.slane %v1906_v48, 7  ;;  %v79_v21 = vld [vmem:[#allocation7 + $0x50] sm:$0xff]  ;;  %v80_v24 = vld [vmem:[#allocation7 + $0x58] sm:$0xff] }
  0x59   :  { %v84_v30 = vld [vmem:[#allocation7 + $0x78] sm:$0xff] }
  0x5b   :  { %1442 = vmatpush1.bf16.msra.mxu0 %v1441_v56  ;;  %v99_v56 = vsel %vm95_vm0, %v92_v51, %v89_v50 }
  0x5c   :  { %1444 = vmatprep.subr.bf16.mxu0 %v1443_v57  ;;  %v90_v57 = vrot.slane %v1916_v52, 7 }
  0x5e   :  { %v98_v3 = vsel %vm95_vm0, %v89_v50, %v90_v57 }
  0x5f   :  { %1446 = vmatpush1.bf16.msra.mxu0 %v1445_v62  ;;  %v91_v62 = vrot.slane %v1921_v55, 7 }
  0x60   :  { %1448 = vmatprep.subr.bf16.mxu0 %v1447_v63 }
  0x61   :  { %v97_v9 = vsel %vm95_vm0, %v90_v57, %v91_v62  ;;  %v96_v18 = vsel %vm95_vm0, %v91_v62, %v92_v51  ;;  %v124_v51 = vrot.slane %v1895_v43, 1  ;;  %v247_v57 = vld [vmem:[#allocation2 + $0x2f0] sm:$0xff] }
  0x63   :  { %1450 = vmatpush1.bf16.msra.mxu0 %v1449_v4  ;;  %v226_v4 = vld [vmem:[#allocation2 + $0x248] sm:$0xff]  ;;  %v131_v58 = vsel %vm128_vm1, %v124_v51, %v125_v53 }
  0x64   :  { %1452 = vmatprep.subr.bf16.mxu0 %v1451_v5  ;;  %v228_v5 = vld [vmem:[#allocation2 + $0x258] sm:$0xff] }
  0x67   :  { %1454 = vmatpush1.bf16.msra.mxu0 %v1453_v10 }
  0x68   :  { %1456 = vmatprep.subr.bf16.mxu0 %v1455_v11  ;;  %v1483_v11 = vpack.c.bf16 %v228_v5, %v226_v4  ;;  %v132_v4 = vsel %vm128_vm1, %v127_v1, %v124_v51 }
  0x6b   :  { %1458 = vmatpush1.bf16.msra.mxu0 %v1457_v16 }
  0x6c   :  { %1460 = vmatprep.subr.bf16.mxu0 %v1459_v19 }
  0x6f   :  { %1462 = vmatpush1.bf16.msra.mxu0 %v1461_v26  ;;  %v236_v26 = vld [vmem:[#allocation2 + $0x298] sm:$0xff] }
  0x70   :  { %1464 = vmatprep.subr.bf16.mxu0 %v1463_v27  ;;  %v1491_v29 = vpack.c.bf16 %v236_v26, %v234_v25  ;;  %v1993_v25 = vpack.c.bf16 %v80_v24, %v79_v21  ;;  %v81_v26 = vld [vmem:[#allocation7 + $0x60] sm:$0xff] }
  0x73   :  { %1466 = vmatpush1.bf16.msra.mxu0 %v1465_v32  ;;  %v238_v32 = vld [vmem:[#allocation2 + $0x2a8] sm:$0xff] }
  0x74   :  { %1468 = vmatprep.subr.bf16.mxu0 %v1467_v33  ;;  %v240_v33 = vld [vmem:[#allocation2 + $0x2b8] sm:$0xff] }
  0x75   :  { %v1495_v36 = vpack.c.bf16 %v240_v33, %v238_v32 }
  0x77   :  { %1470 = vmatpush1.bf16.msra.mxu0 %v1469_v38  ;;  %v239_v38 = vld [vmem:[#allocation2 + $0x2b0] sm:$0xff] }
  0x78   :  { %1472 = vmatprep.subr.bf16.mxu0 %v1471_v39  ;;  %v242_v39 = vld [vmem:[#allocation2 + $0x2c8] sm:$0xff]  ;;  %v1497_v41 = vpack.c.bf16 %v239_v38, %v237_v37 }
  0x79   :  { %v1499_v42 = vpack.c.bf16 %v244_v40, %v242_v39 }
  0x7b   :  { %1474 = vmatpush1.bf16.msra.mxu0 %v1473_v45  ;;  %v243_v45 = vld [vmem:[#allocation2 + $0x2d0] sm:$0xff] }
  0x7c   :  { %1476 = vmatprep.subr.bf16.mxu0 %v1475_v46  ;;  %v246_v46 = vld [vmem:[#allocation2 + $0x2e8] sm:$0xff]  ;;  %v1501_v50 = vpack.c.bf16 %v243_v45, %v241_v44 }
  0x7d   :  { %v1503_v54 = vpack.c.bf16 %v248_v47, %v246_v46 }
  0xb8   :  { %v1926_v60 = vpop.permute.xlu0 %102  ;;  %v1932_v6 = vpop.permute.xlu1 %112 }
  0xb9   :  { %v120_v63 = vmul.f32 %v1926_v60, %v99_v56  ;;  %v122_v16 = vmul.f32 %v1932_v6, %v97_v9  ;;  %v245_v56 = vld [vmem:[#allocation2 + $0x2e0] sm:$0xff]  ;;  %v72_v9 = vld [vmem:[#allocation7 + $0x18] sm:$0xff] }
  0xbb   :  { %314 = vmatmul.mubr.f32.vlgmr.msra.gmra.mrb[0].mxu0 %v120_v63 }
  0xbc   :  { %1478 = vmatpush1.bf16.msra.mxu0 %v1477_v61  ;;  %v1934_v7 = vpop.permute.xlu0 %107  ;;  %319 = vmatprep.mubr.f32.mxu0 %v1916_v52  ;;  %v1944_v19 = vpop.permute.xlu1 %117  ;;  %v1505_v61 = vpack.c.bf16 %v247_v57, %v245_v56  ;;  %v130_v52 = vsel %vm128_vm1, %v125_v53, %v126_v59  ;;  %v665_v56 = vld [vmem:[#allocation5 + $0x88] sm:$0xff] }
  0xbd   :  { %v121_v10 = vmul.f32 %v1934_v7, %v98_v3  ;;  %1480 = vmatprep.subr.bf16.mxu0 %v1479_v0  ;;  %v123_v27 = vmul.f32 %v1944_v19, %v96_v18  ;;  %v78_v18 = vld [vmem:[#allocation7 + $0x48] sm:$0xff] }
  0xbf   :  { %320 = vmatmul.mubr.f32.gmra.mrb[2].mxu0 %v121_v10 }
  0xc0   :  { %1482 = vmatpush1.bf16.msra.mxu0 %v1481_v8  ;;  %325 = vmatprep.mubr.f32.mxu0 %v1921_v55  ;;  %v129_v55 = vsel %vm128_vm1, %v126_v59, %v127_v1  ;;  %v71_v8 = vld [vmem:[#allocation7 + $0x10] sm:$0xff] }
  0xc1   :  { %1484 = vmatprep.subr.bf16.mxu0 %v1483_v11  ;;  %v1955_v62 = vpop.permute.xlu0 %134  ;;  %v1960_v63 = vpop.permute.xlu1 %138  ;;  %v1977_v10 = vpack.c.bf16 %v72_v9, %v71_v8  ;;  %v73_v11 = vld [vmem:[#allocation7 + $0x20] sm:$0xff] }
  0xc2   :  { %v149_v43 = vmul.f32 %v1955_v62, %v131_v58  ;;  %v150_v0 = vmul.f32 %v1960_v63, %v130_v52  ;;  %v1981_v13 = vpack.c.bf16 %v74_v12, %v73_v11  ;;  %v2033_v58 = vsub.s32 0, %v1908_v49 }
  0xc3   :  { %326 = vmatmul.mubr.f32.gmra.mrb[4].mxu0 %v122_v16  ;;  %1512 = vmatpush3.bf16.msra.mxu1 %v1977_v10  ;;  %v1985_v16 = vpack.c.bf16 %v76_v15, %v75_v14 }
  0xc4   :  { %1486 = vmatpush1.bf16.msra.mxu0 %v1485_v17  ;;  %331 = vmatprep.mubr.f32.mxu0 %v1906_v48  ;;  %v77_v17 = vld [vmem:[#allocation7 + $0x40] sm:$0xff] }
  0xc5   :  { %1488 = vmatprep.subr.bf16.mxu0 %v1487_v20  ;;  %v1967_v2 = vpop.permute.xlu1 %142  ;;  %v1973_v5 = vpop.permute.xlu0 %146  ;;  %1513 = vmatprep.subr.bf16.mxu1 %v1799_v22  ;;  %v1989_v20 = vpack.c.bf16 %v78_v18, %v77_v17 }
  0xc6   :  { %v151_v3 = vmul.f32 %v1967_v2, %v129_v55  ;;  %v152_v48 = vmul.f32 %v1973_v5, %v132_v4 }
  0xc7   :  { %332 = vmatmul.mubr.f32.gmra.mrb[6].mxu0 %v123_v27  ;;  %1515 = vmatpush3.bf16.msra.mxu1 %v1981_v13  ;;  %v82_v27 = vld [vmem:[#allocation7 + $0x68] sm:$0xff] }
  0xc8   :  { %1490 = vmatpush1.bf16.msra.mxu0 %v1489_v28  ;;  %402 = vmatprep.mubr.f32.mxu0 %v1800_v35  ;;  %v1997_v28 = vpack.c.bf16 %v82_v27, %v81_v26  ;;  %v648_v27 = vld [vmem:[#allocation5] sm:$0xff] }
  0xc9   :  { %1492 = vmatprep.subr.bf16.mxu0 %v1491_v29  ;;  %1516 = vmatprep.subr.bf16.mxu1 %v1799_v22  ;;  %v83_v29 = vld [vmem:[#allocation7 + $0x70] sm:$0xff] }
  0xca   :  { %v2001_v31 = vpack.c.bf16 %v84_v30, %v83_v29  ;;  %v649_v29 = vld [vmem:[#allocation5 + $0x8] sm:$0xff]  ;;  %v680_v30 = vld [vmem:[#allocation5 + $0x100] sm:$0xff] }
  0xcb   :  { %1518 = vmatpush3.bf16.msra.mxu1 %v1985_v16 }
  0xcc   :  { %1494 = vmatpush1.bf16.msra.mxu0 %v1493_v34  ;;  %1519 = vmatprep.subr.bf16.mxu1 %v1799_v22 }
  0xcd   :  { %1496 = vmatprep.subr.bf16.mxu0 %v1495_v36 }
  0xcf   :  { %1521 = vmatpush3.bf16.msra.mxu1 %v1989_v20 }
  0xd0   :  { %1498 = vmatpush1.bf16.msra.mxu0 %v1497_v41  ;;  %1522 = vmatprep.subr.bf16.mxu1 %v1799_v22 }
  0xd1   :  { %1500 = vmatprep.subr.bf16.mxu0 %v1499_v42 }
  0xd3   :  { %1524 = vmatpush3.bf16.msra.mxu1 %v1993_v25 }
  0xd4   :  { %1502 = vmatpush1.bf16.msra.mxu0 %v1501_v50  ;;  %1525 = vmatprep.subr.bf16.mxu1 %v1799_v22 }
  0xd5   :  { %1504 = vmatprep.subr.bf16.mxu0 %v1503_v54  ;;  %v664_v54 = vld [vmem:[#allocation5 + $0x80] sm:$0xff] }
  0xd6   :  { %v1555_v57 = vpack.c.bf16 %v665_v56, %v664_v54  ;;  %v669_v54 = vld [vmem:[#allocation5 + $0xa8] sm:$0xff] }
  0xd7   :  { %1527 = vmatpush3.bf16.msra.mxu1 %v1997_v28 }
  0xd8   :  { %1506 = vmatpush1.bf16.msra.mxu0 %v1505_v61  ;;  %1528 = vmatprep.subr.bf16.mxu1 %v1799_v22 }
  0xdb   :  { %403 = vmatmul.mubr.f32.vlgmr.msra.gmra.mrb[0].mxu0 %v149_v43  ;;  %1530 = vmatpush3.bf16.msra.mxu1 %v2001_v31 }
  0xdc   :  { %408 = vmatprep.mubr.f32.mxu0 %v1800_v35  ;;  %1531 = vmatprep.subr.bf16.mxu1 %v1799_v22 }
  0xdf   :  { %409 = vmatmul.mubr.f32.gmra.mrb[2].mxu0 %v150_v0 }
  0xe0   :  { %414 = vmatprep.mubr.f32.mxu0 %v1800_v35 }
  0xe3   :  { %415 = vmatmul.mubr.f32.gmra.mrb[4].mxu0 %v151_v3 }
  0xe4   :  { %420 = vmatprep.mubr.f32.mxu0 %v1800_v35 }
  0xe7   :  { %421 = vmatmul.mubr.f32.gmra.mrb[6].mxu0 %v152_v48 }
 0x1ae   :  { %v404_v32 = vpop.f32.mrb[0].mxu0 }
 0x1af   :  { %v2007_v33 = vpop.f32.mrb[1].mxu0 }
 0x1b2   :  { %v410_v34 = vpop.f32.mrb[2].mxu0 }
 0x1b3   :  { %v429_v36 = vadd.f32 %v410_v34, %v404_v32  ;;  %v2009_v37 = vpop.f32.mrb[3].mxu0 }
 0x1b6   :  { %v416_v38 = vpop.f32.mrb[4].mxu0 }
 0x1b7   :  { %v430_v39 = vadd.f32 %v429_v36, %v416_v38  ;;  %v2011_v40 = vpop.f32.mrb[5].mxu0 }
 0x1ba   :  { %v422_v41 = vpop.f32.mrb[6].mxu0 }
 0x1bb   :  { %v431_v42 = vadd.f32 %v430_v39, %v422_v41  ;;  %v2013_v44 = vpop.f32.mrb[7].mxu0  ;;  %v667_v39 = vld [vmem:[#allocation5 + $0x98] sm:$0xff] }
 0x1bd   :  { %v432_v45 = vrot.slane %v431_v42, 4 }
 0x1bf   :  { %v433_v46 = vadd.f32 %v432_v45, %v431_v42  ;;  %v650_v42 = vld [vmem:[#allocation5 + $0x10] sm:$0xff]  ;;  %v651_v45 = vld [vmem:[#allocation5 + $0x18] sm:$0xff] }
 0x1c1   :  { %v434_v47 = vrot.slane %v433_v46, 2 }
 0x1c3   :  { %v435_v50 = vadd.f32 %v434_v47, %v433_v46  ;;  %v682_v46 = vld [vmem:[#allocation5 + $0x110] sm:$0xff]  ;;  %v1561_v47 = vpack.c.bf16 %v651_v45, %v650_v42  ;;  %v659_v45 = vld [vmem:[#allocation5 + $0x58] sm:$0xff] }
 0x1c5   :  { %v436_v51 = vrot.slane %v435_v50, 1 }
 0x1c7   :  { %v437_v53 = vadd.f32 %v436_v51, %v435_v50  ;;  %v683_v50 = vld [vmem:[#allocation5 + $0x118] sm:$0xff] }
 0x1c8   :  { %v1591_v51 = vpack.c.bf16 %v683_v50, %v682_v46  ;;  %v690_v46 = vld [vmem:[#allocation5 + $0x150] sm:$0xff] }
 0x1c9   :  { %1266 = vmatmul.mubr.f32.vlgmr.msra.gmra.mrb[0].mxu1 %v437_v53  ;;  %v668_v53 = vld [vmem:[#allocation5 + $0xa0] sm:$0xff] }
 0x1ca   :  { %1533 = vmatpush3.bf16.msra.mxu1 %v1899_v23  ;;  %1300 = vmatprep.mubr.msk.f32.mxu1 %vm1801_vm2, %v1800_v35  ;;  %v1563_v56 = vpack.c.bf16 %v669_v54, %v668_v53  ;;  %v676_v53 = vld [vmem:[#allocation5 + $0xe0] sm:$0xff]  ;;  %v677_v54 = vld [vmem:[#allocation5 + $0xe8] sm:$0xff] }
 0x1cb   :  { %1534 = vmatprep.subr.bf16.mxu1 %v1799_v22 }
 0x1ce   :  { %1536 = vmatpush3.bf16.msra.mxu1 %v1977_v10 }
 0x1cf   :  { %1537 = vmatprep.subr.bf16.mxu1 %v1799_v22 }
 0x1d2   :  { %1539 = vmatpush3.bf16.msra.mxu1 %v1981_v13 }
 0x1d3   :  { %1540 = vmatprep.subr.bf16.mxu1 %v1799_v22 }
 0x1d6   :  { %1542 = vmatpush3.bf16.msra.mxu1 %v1985_v16 }
 0x1d7   :  { %1543 = vmatprep.subr.bf16.mxu1 %v1799_v22 }
 0x1da   :  { %1545 = vmatpush3.bf16.msra.mxu1 %v1989_v20 }
 0x1db   :  { %1546 = vmatprep.subr.bf16.mxu1 %v1799_v22 }
 0x1de   :  { %1548 = vmatpush3.bf16.msra.mxu1 %v1993_v25 }
 0x1df   :  { %1549 = vmatprep.subr.bf16.mxu1 %v1799_v22 }
 0x1e2   :  { %1551 = vmatpush3.bf16.msra.mxu1 %v1997_v28 }
 0x1e3   :  { %1552 = vmatprep.subr.bf16.mxu1 %v1799_v22 }
 0x1e6   :  { %1554 = vmatpush3.bf16.msra.mxu1 %v2001_v31 }
 0x1e7   :  { %1556 = vmatprep.subr.bf16.mxu1 %v1555_v57  ;;  %v652_v57 = vld [vmem:[#allocation5 + $0x20] sm:$0xff] }
 0x29c   :  { %v504_v59 = vpop.f32.mrb[0].mxu1 }
 0x29d   :  { %v508_v61 = vmul.f32 0.001953125, %v504_v59  ;;  %v1267_v43 = vpop.f32.mrb[1].mxu1  ;;  %v653_v59 = vld [vmem:[#allocation5 + $0x28] sm:$0xff] }
 0x29e   :  { %v1565_v43 = vpack.c.bf16 %v653_v59, %v652_v57  ;;  %v1579_v57 = vpack.c.bf16 %v677_v54, %v676_v53  ;;  %v661_v59 = vld [vmem:[#allocation5 + $0x68] sm:$0xff] }
 0x29f   :  { %v512_v52 = vrot.slane %v508_v61, %v2033_v58  ;;  %v684_v61 = vld [vmem:[#allocation5 + $0x120] sm:$0xff] }
 0x2a1   :  { %v2036_v0 = vsub.f32 %v404_v32, %v512_v52  ;;  %v2038_v1 = vsub.f32 %v410_v34, %v512_v52  ;;  %v2040_v55 = vsub.f32 %v416_v38, %v512_v52  ;;  %v2042_v3 = vsub.f32 %v422_v41, %v512_v52  ;;  %v681_v34 = vld [vmem:[#allocation5 + $0x108] sm:$0xff]  ;;  %v666_v38 = vld [vmem:[#allocation5 + $0x90] sm:$0xff] }
 0x2a2   :  { %v1557_v32 = vpack.c.bf16 %v649_v29, %v648_v27  ;;  %v1587_v36 = vpack.c.bf16 %v681_v34, %v680_v30  ;;  %v1559_v41 = vpack.c.bf16 %v667_v39, %v666_v38  ;;  %v685_v52 = vld [vmem:[#allocation5 + $0x128] sm:$0xff]  ;;  %v656_v27 = vld [vmem:[#allocation5 + $0x40] sm:$0xff]  ;;  %v674_v38 = vld [vmem:[#allocation5 + $0xd0] sm:$0xff] }
 0x2a3   :  { %v517_v4 = vmul.f32 %v2036_v0, %v2036_v0  ;;  %v518_v48 = vmul.f32 %v2038_v1, %v2038_v1  ;;  %v519_v8 = vmul.f32 %v2040_v55, %v2040_v55  ;;  %v520_v11 = vmul.f32 %v2042_v3, %v2042_v3  ;;  %v657_v29 = vld [vmem:[#allocation5 + $0x48] sm:$0xff]  ;;  %v688_v30 = vld [vmem:[#allocation5 + $0x140] sm:$0xff]  ;;  %v675_v39 = vld [vmem:[#allocation5 + $0xd8] sm:$0xff] }
 0x2a4   :  { %1588 = vmatprep.subr.bf16.mxu0 %v1587_v36  ;;  %v689_v34 = vld [vmem:[#allocation5 + $0x148] sm:$0xff]  ;;  %v1575_v42 = vpack.c.bf16 %v675_v39, %v674_v38 }
 0x2a5   :  { %v521_v9 = vadd.f32 %v518_v48, %v517_v4  ;;  %1590 = vmatpush3.bf16.msra.mxu0 %v1587_v36  ;;  %v1595_v4 = vpack.c.bf16 %v685_v52, %v684_v61  ;;  %v670_v48 = vld [vmem:[#allocation5 + $0xb0] sm:$0xff]  ;;  %v1603_v36 = vpack.c.bf16 %v689_v34, %v688_v30  ;;  %v692_v61 = vld [vmem:[#allocation5 + $0x160] sm:$0xff] }
 0x2a6   :  { %1592 = vmatprep.subr.bf16.mxu0 %v1591_v51 }
 0x2a7   :  { %v522_v12 = vadd.f32 %v521_v9, %v519_v8  ;;  %v671_v8 = vld [vmem:[#allocation5 + $0xb8] sm:$0xff] }
 0x2a8   :  { %v1567_v9 = vpack.c.bf16 %v671_v8, %v670_v48  ;;  %v678_v48 = vld [vmem:[#allocation5 + $0xf0] sm:$0xff]  ;;  %v679_v8 = vld [vmem:[#allocation5 + $0xf8] sm:$0xff] }
 0x2a9   :  { %v523_v14 = vadd.f32 %v522_v12, %v520_v11  ;;  %1594 = vmatpush3.bf16.msra.mxu0 %v1591_v51  ;;  %v654_v11 = vld [vmem:[#allocation5 + $0x30] sm:$0xff]  ;;  %v655_v12 = vld [vmem:[#allocation5 + $0x38] sm:$0xff] }
 0x2aa   :  { %1596 = vmatprep.subr.bf16.mxu0 %v1595_v4 }
 0x2ab   :  { %v524_v15 = vrot.slane %v523_v14, 4 }
 0x2ad   :  { %v525_v17 = vadd.f32 %v524_v15, %v523_v14  ;;  %v686_v14 = vld [vmem:[#allocation5 + $0x130] sm:$0xff]  ;;  %1598 = vmatpush3.bf16.msra.mxu0 %v1595_v4  ;;  %v1569_v15 = vpack.c.bf16 %v655_v12, %v654_v11  ;;  %v663_v12 = vld [vmem:[#allocation5 + $0x78] sm:$0xff] }
 0x2ae   :  { %v662_v11 = vld [vmem:[#allocation5 + $0x70] sm:$0xff] }
 0x2af   :  { %v526_v18 = vrot.slane %v525_v17, 2 }
 0x2b1   :  { %v527_v21 = vadd.f32 %v526_v18, %v525_v17  ;;  %v687_v17 = vld [vmem:[#allocation5 + $0x138] sm:$0xff] }
 0x2b2   :  { %v1599_v18 = vpack.c.bf16 %v687_v17, %v686_v14  ;;  %v694_v14 = vld [vmem:[#allocation5 + $0x170] sm:$0xff]  ;;  %v695_v17 = vld [vmem:[#allocation5 + $0x178] sm:$0xff] }
 0x2b3   :  { %v528_v24 = vrot.slane %v527_v21, 1 }
 0x2b4   :  { %1600 = vmatprep.subr.bf16.mxu0 %v1599_v18 }
 0x2b5   :  { %v529_v26 = vadd.f32 %v528_v24, %v527_v21  ;;  %v672_v21 = vld [vmem:[#allocation5 + $0xc0] sm:$0xff]  ;;  %v673_v24 = vld [vmem:[#allocation5 + $0xc8] sm:$0xff]  ;;  %1602 = vmatpush3.bf16.msra.mxu0 %v1599_v18  ;;  %v1615_v18 = vpack.c.bf16 %v695_v17, %v694_v14 }
 0x2b6   :  { %1604 = vmatprep.subr.bf16.mxu0 %v1603_v36 }
 0x2b7   :  { %1301 = vmatmul.mubr.f32.vlgmr.msra.gmra.mrb[2].mxu1 %v529_v26  ;;  %v1571_v26 = vpack.c.bf16 %v673_v24, %v672_v21 }
 0x2b8   :  { %1558 = vmatpush3.bf16.msra.mxu1 %v1557_v32  ;;  %v1573_v32 = vpack.c.bf16 %v657_v29, %v656_v27  ;;  %v427_v29 = vld [vmem:[%s2157_s4] sm:$0x1] }
 0x2b9   :  { %1560 = vmatprep.subr.bf16.mxu1 %v1559_v41  ;;  %v658_v41 = vld [vmem:[#allocation5 + $0x50] sm:$0xff]  ;;  %1606 = vmatpush3.bf16.msra.mxu0 %v1603_v36  ;;  %v1098_v36 = vld [vmem:[%s2157_s4 + $0x1] ss:$0 sm:$0xff] }
 0x2ba   :  { %v1577_v50 = vpack.c.bf16 %v659_v45, %v658_v41 }
 0x2bc   :  { %1562 = vmatpush3.bf16.msra.mxu1 %v1561_v47  ;;  %v691_v47 = vld [vmem:[#allocation5 + $0x158] sm:$0xff] }
 0x2bd   :  { %1564 = vmatprep.subr.bf16.mxu1 %v1563_v56  ;;  %v1607_v51 = vpack.c.bf16 %v691_v47, %v690_v46  ;;  %v660_v56 = vld [vmem:[#allocation5 + $0x60] sm:$0xff] }
 0x2be   :  { %v1581_v52 = vpack.c.bf16 %v661_v59, %v660_v56 }
 0x2bf   :  { %1608 = vmatprep.subr.bf16.mxu0 %v1607_v51 }
 0x2c0   :  { %1566 = vmatpush3.bf16.msra.mxu1 %v1565_v43  ;;  %v693_v43 = vld [vmem:[#allocation5 + $0x168] sm:$0xff]  ;;  %1610 = vmatpush3.bf16.msra.mxu0 %v1607_v51 }
 0x2c1   :  { %1568 = vmatprep.subr.bf16.mxu1 %v1567_v9  ;;  %v1611_v4 = vpack.c.bf16 %v693_v43, %v692_v61  ;;  %v1583_v9 = vpack.c.bf16 %v679_v8, %v678_v48 }
 0x2c3   :  { %1612 = vmatprep.subr.bf16.mxu0 %v1611_v4 }
 0x2c4   :  { %1570 = vmatpush3.bf16.msra.mxu1 %v1569_v15  ;;  %1614 = vmatpush3.bf16.msra.mxu0 %v1611_v4  ;;  %v1585_v15 = vpack.c.bf16 %v663_v12, %v662_v11 }
 0x2c5   :  { %1572 = vmatprep.subr.bf16.mxu1 %v1571_v26  ;;  %1616 = vmatprep.subr.bf16.mxu0 %v1615_v18 }
 0x2c8   :  { %1574 = vmatpush3.bf16.msra.mxu1 %v1573_v32  ;;  %1618 = vmatpush3.bf16.msra.mxu0 %v1615_v18 }
 0x2c9   :  { %1576 = vmatprep.subr.bf16.mxu1 %v1575_v42  ;;  %1643 = vmatprep.subr.bf16.mxu0 %v1799_v22 }
 0x2cc   :  { %1578 = vmatpush3.bf16.msra.mxu1 %v1577_v50 }
 0x2cd   :  { %1580 = vmatprep.subr.bf16.mxu1 %v1579_v57 }
 0x2d0   :  { %1582 = vmatpush3.bf16.msra.mxu1 %v1581_v52 }
 0x2d1   :  { %1584 = vmatprep.subr.bf16.mxu1 %v1583_v9 }
 0x2d4   :  { %1586 = vmatpush3.bf16.msra.mxu1 %v1585_v15 }
 0x2d5   :  { %1619 = vmatprep.subr.bf16.mxu1 %v1799_v22 }
 0x38a   :  { %v596_v21 = vpop.f32.mrb[2].mxu1 }
 0x38b   :  { %v600_v24 = vmul.f32 0.001953125, %v596_v21  ;;  %v1302_v26 = vpop.f32.mrb[3].mxu1 }
 0x38d   :  { %v601_v27 = vadd.f32 1e-05, %v600_v24 }
 0x38f   :  { %1692 = vrsqrt.f32 %v601_v27 }
 0x399   :  { %v1693_v30 = vpop.eup %1692 }
 0x39a   :  { %v603_v32 = vmul.f32 %v1693_v30, %v427_v29 }
 0x39c   :  { %v607_v34 = vrot.slane %v603_v32, %v2033_v58 }
 0x39e   :  { %v608_v38 = vmul.f32 %v607_v34, %v2036_v0  ;;  %v609_v39 = vmul.f32 %v607_v34, %v2038_v1  ;;  %v610_v41 = vmul.f32 %v607_v34, %v2040_v55  ;;  %v611_v42 = vmul.f32 %v607_v34, %v2042_v3 }
 0x3a0   :  { %v616_v45 = vadd.f32 %v1098_v36, %v608_v38  ;;  %v617_v46 = vadd.f32 %v1098_v36, %v609_v39  ;;  %v618_v47 = vadd.f32 %v1098_v36, %v610_v41  ;;  %v619_v50 = vadd.f32 %v1098_v36, %v611_v42 }
 0x3a2   :  { %v620_v51 = vmax.f32 %v616_v45, 0.0  ;;  %v621_v53 = vmax.f32 %v617_v46, 0.0  ;;  %v622_v54 = vmax.f32 %v618_v47, 0.0  ;;  %v623_v56 = vmax.f32 %v619_v50, 0.0 }
 0x3a4   :  { %v624_v57 = vrot.slane %v620_v51, 7  ;;  %v636_v59 = vrot.slane %v620_v51, 1  ;;  %760 = vmatprep.mubr.f32.mxu1 %v620_v51  ;;  %v627_v61 = vrot.slane %v623_v56, 7  ;;  %v637_v43 = vrot.slane %v621_v53, 1 }
 0x3a5   :  { %v638_v0 = vrot.slane %v622_v54, 1  ;;  %v639_v52 = vrot.slane %v623_v56, 1  ;;  %v625_v1 = vrot.slane %v621_v53, 7  ;;  %v626_v14 = vrot.slane %v622_v54, 7 }
 0x3a6   :  { %v631_v55 = vsel %vm95_vm0, %v627_v61, %v624_v57  ;;  %v642_v3 = vsel %vm128_vm1, %v636_v59, %v637_v43 }
 0x3a7   :  { %v632_v4 = vmul.f32 %v631_v55, %v1926_v60  ;;  %v644_v48 = vmul.f32 %v642_v3, %v1955_v62  ;;  %v641_v8 = vsel %vm128_vm1, %v637_v43, %v638_v0  ;;  %v640_v9 = vsel %vm128_vm1, %v638_v0, %v639_v52 }
 0x3a8   :  { %v645_v11 = vmul.f32 %v641_v8, %v1960_v63  ;;  %v630_v12 = vsel %vm95_vm0, %v624_v57, %v625_v1  ;;  %v646_v15 = vmul.f32 %v640_v9, %v1967_v2  ;;  %v643_v60 = vsel %vm128_vm1, %v639_v52, %v636_v59 }
 0x3a9   :  { %761 = vmatmul.mubr.f32.vlgmr.msra.gmra.mrb[4].mxu1 %v632_v4  ;;  %1335 = vmatprep.mubr.f32.mxu0 %v644_v48  ;;  %v633_v62 = vmul.f32 %v630_v12, %v1934_v7  ;;  %v647_v63 = vmul.f32 %v643_v60, %v1973_v5  ;;  %v629_v17 = vsel %vm95_vm0, %v625_v1, %v626_v14 }
 0x3aa   :  { %765 = vmatprep.mubr.f32.mxu1 %v621_v53  ;;  %1336 = vmatmul.mubr.f32.vlgmr.msra.gmra.mrb[8].mxu0 %v645_v11  ;;  %v634_v2 = vmul.f32 %v629_v17, %v1932_v6  ;;  %v628_v7 = vsel %vm95_vm0, %v626_v14, %v627_v61 }
 0x3ab   :  { %1338 = vmatprep.mubr.f32.mxu0 %v646_v15  ;;  %1621 = vmatpush3.bf16.msra.mxu1 %v1899_v23 }
 0x3ac   :  { %1622 = vmatprep.subr.bf16.mxu1 %v1799_v22  ;;  %1645 = vmatpush3.bf16.msra.mxu0 %v1899_v23  ;;  %v635_v23 = vmul.f32 %v628_v7, %v1944_v19  ;;  %v1100_v7 = vld [vmem:[%s2157_s4 + $0x4] ss:$0 sm:$0xff] }
 0x3ad   :  { %766 = vmatmul.mubr.f32.gmra.mrb[6].mxu1 %v633_v62  ;;  %1646 = vmatprep.subr.bf16.mxu0 %v1799_v22 }
 0x3ae   :  { %770 = vmatprep.mubr.f32.mxu1 %v622_v54  ;;  %1339 = vmatmul.mubr.f32.gmra.mrb[10].mxu0 %v647_v63  ;;  %v866_v63 = vld [vmem:[%s2157_s4 + $0x2] sm:$0x1] }
 0x3af   :  { %1624 = vmatpush3.bf16.msra.mxu1 %v1977_v10  ;;  %1408 = vmatprep.mubr.msk.f32.mxu0 %vm1801_vm2, %v1800_v35 }
 0x3b0   :  { %1625 = vmatprep.subr.bf16.mxu1 %v1799_v22  ;;  %1648 = vmatpush3.bf16.msra.mxu0 %v1977_v10 }
 0x3b1   :  { %771 = vmatmul.mubr.f32.gmra.mrb[8].mxu1 %v634_v2  ;;  %1649 = vmatprep.subr.bf16.mxu0 %v1799_v22 }
 0x3b2   :  { %775 = vmatprep.mubr.f32.mxu1 %v623_v56 }
 0x3b3   :  { %1627 = vmatpush3.bf16.msra.mxu1 %v1981_v13 }
 0x3b4   :  { %1628 = vmatprep.subr.bf16.mxu1 %v1799_v22  ;;  %1651 = vmatpush3.bf16.msra.mxu0 %v1981_v13 }
 0x3b5   :  { %776 = vmatmul.mubr.f32.gmra.mrb[10].mxu1 %v635_v23  ;;  %1652 = vmatprep.subr.bf16.mxu0 %v1799_v22 }
 0x3b6   :  { %1373 = vmatprep.mubr.msk.f32.mxu1 %vm1801_vm2, %v1800_v35 }
 0x3b7   :  { %1630 = vmatpush3.bf16.msra.mxu1 %v1985_v16 }
 0x3b8   :  { %1631 = vmatprep.subr.bf16.mxu1 %v1799_v22  ;;  %1654 = vmatpush3.bf16.msra.mxu0 %v1985_v16 }
 0x3b9   :  { %1655 = vmatprep.subr.bf16.mxu0 %v1799_v22 }
 0x3bb   :  { %1633 = vmatpush3.bf16.msra.mxu1 %v1989_v20 }
 0x3bc   :  { %1634 = vmatprep.subr.bf16.mxu1 %v1799_v22  ;;  %1657 = vmatpush3.bf16.msra.mxu0 %v1989_v20 }
 0x3bd   :  { %1658 = vmatprep.subr.bf16.mxu0 %v1799_v22 }
 0x3bf   :  { %1636 = vmatpush3.bf16.msra.mxu1 %v1993_v25 }
 0x3c0   :  { %1637 = vmatprep.subr.bf16.mxu1 %v1799_v22  ;;  %1660 = vmatpush3.bf16.msra.mxu0 %v1993_v25 }
 0x3c1   :  { %1661 = vmatprep.subr.bf16.mxu0 %v1799_v22 }
 0x3c3   :  { %1639 = vmatpush3.bf16.msra.mxu1 %v1997_v28 }
 0x3c4   :  { %1640 = vmatprep.subr.bf16.mxu1 %v1799_v22  ;;  %1663 = vmatpush3.bf16.msra.mxu0 %v1997_v28 }
 0x3c5   :  { %1664 = vmatprep.subr.bf16.mxu0 %v1799_v22 }
 0x3c7   :  { %1642 = vmatpush3.bf16.msra.mxu1 %v2001_v31 }
 0x3c8   :  { %1666 = vmatpush3.bf16.msra.mxu0 %v2001_v31 }
 0x47c   :  { %v1167_v49 = vpop.f32.mrb[4].mxu1 }
 0x47d   :  { %v1168_v6 = vpop.f32.mrb[5].mxu1  ;;  %v1337_v19 = vpop.f32.mrb[8].mxu0 }
 0x47e   :  { %v1169_v35 = vadd.f32 %v1168_v6, %v1167_v49  ;;  %v847_v5 = vpop.f32.mrb[9].mxu0  ;;  %v1099_v49 = vld [vmem:[%s2157_s4 + $0x3] ss:$0 sm:$0xff]  ;;  %s1762_s4 = scalar_lea.vmem %s1086_s13, 512 }
 0x47f   :  { %p1763_p10 = scmp.ne.s32.totalorder %s1086_s13, %s1762_s4  ;;  %p1768_p12 = scmp.lt.s32.totalorder %s1762_s4, %s1762_s4 }
 0x480   :  { %v848_v10 = vadd.f32 %v1169_v35, %v847_v5  ;;  %v1170_v13 = vpop.f32.mrb[6].mxu1 }
 0x481   :  { %v1171_v16 = vpop.f32.mrb[7].mxu1  ;;  %v1340_v20 = vpop.f32.mrb[10].mxu0  ;;  %p1769_p13 = por %p1768_p12, %p1767_p11 }
 0x482   :  { %v1172_v25 = vadd.f32 %v1171_v16, %v1170_v13  ;;  %v857_v18 = vpop.f32.mrb[11].mxu0  ;;  %v1065_v13 = vadd.f32 %v1100_v7, %v2009_v37  ;;  %v1066_v16 = vadd.f32 %v1100_v7, %v2011_v40 }
 0x483   :  { %p1770_p0 = pnand %p1769_p13, %p1763_p10 }
 0x484   :  { %v853_v21 = vadd.f32 %v1337_v19, %v1172_v25  ;;  %v1173_v24 = vpop.f32.mrb[8].mxu1 }
 0x485   :  { %v1174_v28 = vpop.f32.mrb[9].mxu1 }
 0x486   :  { %v1175_v26 = vadd.f32 %v1174_v28, %v1173_v24  ;;  %v868_v30 = vadd.f32 %v853_v21, %v848_v10 }
 0x488   :  { %v858_v22 = vadd.f32 %v1175_v26, %v857_v18  ;;  %v1176_v27 = vpop.f32.mrb[10].mxu1 }
 0x489   :  { %v1177_v29 = vpop.f32.mrb[11].mxu1 }
 0x48a   :  { %v1178_v31 = vadd.f32 %v1177_v29, %v1176_v27  ;;  %v869_v32 = vadd.f32 %v868_v30, %v858_v22 }
 0x48c   :  { %v863_v34 = vadd.f32 %v1340_v20, %v1178_v31  ;;  %v1067_v20 = vadd.f32 %v1100_v7, %v2013_v44 }
 0x48e   :  { %v870_v36 = vadd.f32 %v869_v32, %v863_v34 }
 0x490   :  { %v871_v38 = vrot.slane %v870_v36, 4 }
 0x492   :  { %v872_v39 = vadd.f32 %v871_v38, %v870_v36 }
 0x494   :  { %v873_v41 = vrot.slane %v872_v39, 2 }
 0x496   :  { %v874_v42 = vadd.f32 %v873_v41, %v872_v39 }
 0x498   :  { %v875_v45 = vrot.slane %v874_v42, 1 }
 0x49a   :  { %v876_v46 = vadd.f32 %v875_v45, %v874_v42 }
 0x49c   :  { %1374 = vmatmul.mubr.f32.vlgmr.msra.gmra.mrb[12].mxu1 %v876_v46 }
 0x56f   :  { %v943_v47 = vpop.f32.mrb[12].mxu1 }
 0x570   :  { %v947_v50 = vmul.f32 0.001953125, %v943_v47  ;;  %v1375_v51 = vpop.f32.mrb[13].mxu1 }
 0x572   :  { %v951_v53 = vrot.slane %v947_v50, %v2033_v58 }
 0x574   :  { %v952_v54 = vsub.f32 %v848_v10, %v951_v53  ;;  %v953_v56 = vsub.f32 %v853_v21, %v951_v53  ;;  %v954_v57 = vsub.f32 %v858_v22, %v951_v53  ;;  %v955_v59 = vsub.f32 %v863_v34, %v951_v53 }
 0x575   :  { %v1064_v10 = vadd.f32 %v1100_v7, %v2007_v33 }
 0x576   :  { %v956_v61 = vmul.f32 %v952_v54, %v952_v54  ;;  %v957_v43 = vmul.f32 %v953_v56, %v953_v56  ;;  %v958_v0 = vmul.f32 %v954_v57, %v954_v57  ;;  %v959_v1 = vmul.f32 %v955_v59, %v955_v59 }
 0x578   :  { %v960_v52 = vadd.f32 %v957_v43, %v956_v61 }
 0x57a   :  { %v961_v55 = vadd.f32 %v960_v52, %v958_v0 }
 0x57c   :  { %v962_v3 = vadd.f32 %v961_v55, %v959_v1 }
 0x57e   :  { %v963_v4 = vrot.slane %v962_v3, 4 }
 0x580   :  { %v964_v48 = vadd.f32 %v963_v4, %v962_v3 }
 0x582   :  { %v965_v8 = vrot.slane %v964_v48, 2 }
 0x584   :  { %v966_v9 = vadd.f32 %v965_v8, %v964_v48 }
 0x586   :  { %v967_v11 = vrot.slane %v966_v9, 1 }
 0x588   :  { %v968_v12 = vadd.f32 %v967_v11, %v966_v9 }
 0x58a   :  { %1409 = vmatmul.mubr.f32.vlgmr.msra.gmra.mrb[12].mxu0 %v968_v12 }
 0x65d   :  { %v1035_v14 = vpop.f32.mrb[12].mxu0 }
 0x65e   :  { %v1039_v15 = vmul.f32 0.001953125, %v1035_v14  ;;  %v1410_v60 = vpop.f32.mrb[13].mxu0 }
 0x660   :  { %v1040_v62 = vadd.f32 1e-05, %v1039_v15 }
 0x662   :  { %1694 = vrsqrt.f32 %v1040_v62 }
 0x66c   :  { %v1695_v17 = vpop.eup %1694 }
 0x66d   :  { %v1042_v2 = vmul.f32 %v1695_v17, %v866_v63 }
 0x66f   :  { %v1046_v23 = vrot.slane %v1042_v2, %v2033_v58 }
 0x671   :  { %v1047_v6 = vmul.f32 %v1046_v23, %v952_v54  ;;  %v1048_v19 = vmul.f32 %v1046_v23, %v953_v56  ;;  %v1049_v35 = vmul.f32 %v1046_v23, %v954_v57  ;;  %v1050_v5 = vmul.f32 %v1046_v23, %v955_v59 }
 0x673   :  { %v1055_v25 = vadd.f32 %v1099_v49, %v1047_v6  ;;  %v1056_v18 = vadd.f32 %v1099_v49, %v1048_v19  ;;  %v1057_v21 = vadd.f32 %v1099_v49, %v1049_v35  ;;  %v1058_v58 = vadd.f32 %v1099_v49, %v1050_v5 }
 0x675   :  { %v1068_v24 = vadd.f32 %v1064_v10, %v1055_v25  ;;  %v1069_v28 = vadd.f32 %v1065_v13, %v1056_v18  ;;  %v1070_v26 = vadd.f32 %v1066_v16, %v1057_v21  ;;  %v1071_v22 = vadd.f32 %v1067_v20, %v1058_v58 }
 0x677   :  { %v1072_v27 = vmax.f32 %v1068_v24, 0.0  ;;  %v1073_v29 = vmax.f32 %v1069_v28, 0.0  ;;  %v1074_v30 = vmax.f32 %v1070_v26, 0.0  ;;  %v1075_v33 = vmax.f32 %v1071_v22, 0.0 }
 0x679   :  { %1076 = vst [vmem:[#allocation8] sm:$0xff] %v1072_v27  ;;  %1077 = vst [vmem:[#allocation8 + $0x8] sm:$0xff] %v1073_v29 }
 0x67a   :  { %1078 = vst [vmem:[#allocation8 + $0x10] sm:$0xff] %v1074_v30  ;;  %1079 = vst [vmem:[#allocation8 + $0x18] sm:$0xff] %v1075_v33 }
 0x67b   :  { %1773 = shalt.err (!%p1770_p0)
}
 0x67c   :  { %s1774_s16 = scalar_lea.hbm %s2159_s6, 512 }
 0x67d   :  { %p1775_p1 = scmp.ne.s32.totalorder %s2159_s6, %s1774_s16  ;;  %p1778_p2 = scmp.lt.u32.totalorder %s1774_s16, %s2159_s6 }
 0x67f   :  { %p1780_p3 = pnand %p1778_p2, %p1775_p1 }
 0x681   :  { %1783 = shalt.err (!%p1780_p3)
}
 0x682   :  { %1091 = dma.vmem_to_hbm [thread:$0]  %s1086_s13, 512, %s2159_s6, [#allocation4], %s1791_s7, %s1791_s7, %s1792_s8  }
 0x683   :  { %1788 = dma.done.wait [#allocation4], 512  }
 0x684   :  { %1789 = vsyncadd [#allocation4], 4294966784 }
 0x685   :  { %1095 = vsyncpa [#allocation3], 1 }
 0x686   :  { %1096 = vsyncpa [#allocation6], 1 }
 0x687   :  { %1097 = vsyncpa [#allocation4], 1 }

</bundles_post_ra>
